<compile_context>
chip_gen: v6e
topology: v6e:2x2x1
jax: 0.10.0
libtpu: 0.0.40
codegen_flags: <defaults>
</compile_context>

<pallas_src>
import functools

import jax
import jax.numpy as jnp
from jax.experimental import pallas as pl
from jax.experimental.pallas import tpu as pltpu

_LANE = 128          # lane width (last-dim alignment)
_SUBLANE_BF16 = 16   # bf16 sublane packing (rows per vreg)


def _round_up(x, m):
    return (x + m - 1) // m * m


# ---------------------------------------------------------------------------
# Kernel: one grid step == one decode step.  2 MXU matmuls + GRU gate math.
#   x_ref    : (Bp, Ep+Hp)        bf16   per-step [emb | ctx] slab
#   h0_ref   : (Bp, Hp)           f32    initial hidden state (read at t==0)
#   w_big_ref: (Ep+2Hp, 4Hp+Op)   bf16   fused [r | z | n_x | n_h | fc_xc] weight
#   w_fch_ref: (Hp, Op)           bf16   fc weight rows for h_new
#   b_big_ref: (1, 4Hp+Op)        f32    fused bias (r,z have b_ih+b_hh folded)
#   pred_ref : (Bp, Op)           f32    per-step logits
#   hfin_ref : (Bp, Hp)           f32    final hidden state (written at last step)
#   h_sc     : (Bp, Hp)           f32    VMEM scratch carrying h across steps
# ---------------------------------------------------------------------------
def _decoder_seq_kernel(x_ref, h0_ref, w_big_ref, w_fch_ref, b_big_ref,
                        pred_ref, hfin_ref, h_sc, *, hp):
    t = pl.program_id(0)

    @pl.when(t == 0)
    def _():
        h_sc[...] = h0_ref[...]

    h = h_sc[...]                                                     # (Bp, Hp) f32

    # [emb | ctx | h] -- 128-aligned lane concat; single fused matmul produces
    # [r | z | n_x | n_h | fc(emb,ctx)] in one shot.
    x_full = jnp.concatenate([x_ref[...], h.astype(jnp.bfloat16)], axis=-1)
    g = jnp.dot(x_full, w_big_ref[...],
                preferred_element_type=jnp.float32) + b_big_ref[...]  # (Bp, 4Hp+Op)

    # PyTorch GRU: r,z fully formed; n = tanh(n_x + r * n_h); slices 128-aligned.
    r = jax.nn.sigmoid(g[:, 0:hp])
    z = jax.nn.sigmoid(g[:, hp:2 * hp])
    n = jnp.tanh(g[:, 2 * hp:3 * hp] + r * g[:, 3 * hp:4 * hp])
    h_new = (1.0 - z) * n + z * h

    # fc(cat(emb, h_new, ctx)): emb/ctx (+ bias) already in g's fc block; add h part.
    pred = g[:, 4 * hp:] + jnp.dot(h_new.astype(jnp.bfloat16), w_fch_ref[...],
                                   preferred_element_type=jnp.float32)

    pred_ref[...] = pred
    h_sc[...] = h_new

    @pl.when(t == pl.num_programs(0) - 1)
    def _():
        hfin_ref[...] = h_new


# ---------------------------------------------------------------------------
# Parameter init (PyTorch layout) and one-time preprocessing.
# ---------------------------------------------------------------------------
def init_decoder_params(key, out_dim, emb_dim, hid_dim):
    ks = jax.random.split(key, 7)
    scale = 0.1
    return {
        "embedding": scale * jax.random.normal(ks[0], (out_dim, emb_dim), jnp.float32),
        # PyTorch GRU: weight_ih (3H, E+H), weight_hh (3H, H), gate order [r, z, n]
        "w_ih": scale * jax.random.normal(ks[1], (3 * hid_dim, emb_dim + hid_dim), jnp.float32),
        "w_hh": scale * jax.random.normal(ks[2], (3 * hid_dim, hid_dim), jnp.float32),
        "b_ih": scale * jax.random.normal(ks[3], (3 * hid_dim,), jnp.float32),
        "b_hh": scale * jax.random.normal(ks[4], (3 * hid_dim,), jnp.float32),
        # fc: Linear(emb_dim + 2*hid_dim -> out_dim); input = cat(emb, h, ctx)
        "w_fc": scale * jax.random.normal(ks[5], (out_dim, emb_dim + 2 * hid_dim), jnp.float32),
        "b_fc": scale * jax.random.normal(ks[6], (out_dim,), jnp.float32),
    }


def prepare_decoder_params(params, *, emb_dim, hid_dim, out_dim):
    """One-time weight prep: transpose, pad to 128-lane blocks, fuse, cast to bf16.

    Called once per model (outside the decode loop); `decoder_decode` consumes the
    result, so no weight reshuffling sits on the sequential per-step critical path.
    """
    ep = _round_up(emb_dim, _LANE)
    hp = _round_up(hid_dim, _LANE)
    op = _round_up(out_dim, _LANE)
    H = hid_dim
    f32 = jnp.float32

    emb_tab = jnp.zeros((out_dim, ep), f32).at[:, :emb_dim].set(params["embedding"])

    w_ih_t = params["w_ih"].T          # (E+H, 3H): rows [emb | ctx], cols gate-major [r,z,n]
    w_hh_t = params["w_hh"].T          # (H, 3H)
    w_fc_t = params["w_fc"].T          # (E+2H, O): rows [emb | h | ctx]

    # Fused weight: rows [0:E]=emb, [ep:ep+H]=ctx, [ep+hp:ep+hp+H]=h
    # cols [0:hp]=r, [hp:2hp]=z, [2hp:3hp]=n_x, [3hp:4hp]=n_h, [4hp:4hp+O]=fc(emb,ctx)
    w_big = jnp.zeros((ep + 2 * hp, 4 * hp + op), f32)
    for gate in (0, 1):                                   # r, z: fold x- and h-side
        c = gate * hp
        w_big = w_big.at[:emb_dim, c:c + H].set(w_ih_t[:emb_dim, gate * H:(gate + 1) * H])
        w_big = w_big.at[ep:ep + H, c:c + H].set(w_ih_t[emb_dim:, gate * H:(gate + 1) * H])
        w_big = w_big.at[ep + hp:ep + hp + H, c:c + H].set(w_hh_t[:, gate * H:(gate + 1) * H])
    # n_x: x-side only (emb + ctx rows)
    w_big = w_big.at[:emb_dim, 2 * hp:2 * hp + H].set(w_ih_t[:emb_dim, 2 * H:3 * H])
    w_big = w_big.at[ep:ep + H, 2 * hp:2 * hp + H].set(w_ih_t[emb_dim:, 2 * H:3 * H])
    # n_h: h rows only -- MUST stay its own block (scaled by r before the tanh).
    w_big = w_big.at[ep + hp:ep + hp + H, 3 * hp:3 * hp + H].set(w_hh_t[:, 2 * H:3 * H])
    # fc emb + ctx contributions (h_new contribution handled by w_fch).
    w_big = w_big.at[:emb_dim, 4 * hp:4 * hp + out_dim].set(w_fc_t[:emb_dim])
    w_big = w_big.at[ep:ep + H, 4 * hp:4 * hp + out_dim].set(w_fc_t[emb_dim + H:])

    w_fch = jnp.zeros((hp, op), f32).at[:H, :out_dim].set(w_fc_t[emb_dim:emb_dim + H])

    b_big = jnp.zeros((1, 4 * hp + op), f32)
    b_big = b_big.at[0, 0:H].set(params["b_ih"][0:H] + params["b_hh"][0:H])                 # r
    b_big = b_big.at[0, hp:hp + H].set(params["b_ih"][H:2 * H] + params["b_hh"][H:2 * H])   # z
    b_big = b_big.at[0, 2 * hp:2 * hp + H].set(params["b_ih"][2 * H:3 * H])                 # n_x
    b_big = b_big.at[0, 3 * hp:3 * hp + H].set(params["b_hh"][2 * H:3 * H])                 # n_h
    b_big = b_big.at[0, 4 * hp:4 * hp + out_dim].set(params["b_fc"])                        # fc

    return {
        "emb_tab": emb_tab.astype(jnp.bfloat16),
        "w_big": w_big.astype(jnp.bfloat16),
        "w_fch": w_fch.astype(jnp.bfloat16),
        "b_big": b_big,
    }


# ---------------------------------------------------------------------------
# Multi-step decode (weights resident across the whole sequence).
# ---------------------------------------------------------------------------
def _decode_impl(prep, tokens, h0, context, emb_dim, hid_dim, out_dim):
    """tokens: (T, B) int32; h0, context: (1, B, hid_dim) f32.
    Returns (predictions (T, B, out_dim), h_final (1, B, hid_dim))."""
    T, B = tokens.shape
    ep = _round_up(emb_dim, _LANE)
    hp = _round_up(hid_dim, _LANE)
    op = _round_up(out_dim, _LANE)
    bp = _round_up(max(B, _SUBLANE_BF16), _SUBLANE_BF16)
    k_in = ep + hp

    # Once-per-sequence glue (off the per-step path): embedding gather for ALL steps
    # (dropout = identity in eval mode), context broadcast, zero-padding to vreg
    # granularity.  Padded rows/lanes are zero -> isolated, sliced off at the end.
    emb = jnp.take(prep["emb_tab"], tokens.reshape(-1), axis=0).reshape(T, B, ep)
    x_in = jnp.zeros((T, bp, k_in), jnp.bfloat16)
    x_in = x_in.at[:, :B, :ep].set(emb)
    x_in = x_in.at[:, :B, ep:ep + hid_dim].set(
        jnp.broadcast_to(context[0].astype(jnp.bfloat16), (T, B, hid_dim)))
    x_in = x_in.reshape(T * bp, k_in)                                  # 2-D, lane-dense
    h0_p = jnp.zeros((bp, hp), jnp.float32).at[:B, :hid_dim].set(h0[0])

    const = lambda t: (0, 0)
    grid_spec = pltpu.PrefetchScalarGridSpec(
        num_scalar_prefetch=0,
        grid=(T,),
        in_specs=[
            pl.BlockSpec((bp, k_in), lambda t: (t, 0)),                # per-step slab
            pl.BlockSpec((bp, hp), const),                             # h0 (read once)
            pl.BlockSpec((ep + 2 * hp, 4 * hp + op), const),           # fused weight
            pl.BlockSpec((hp, op), const),                             # fc h weight
            pl.BlockSpec((1, 4 * hp + op), const),                     # fused bias
        ],
        out_specs=(
            pl.BlockSpec((bp, op), lambda t: (t, 0)),                  # per-step logits
            pl.BlockSpec((bp, hp), const),                             # final hidden
        ),
        scratch_shapes=[pltpu.VMEM((bp, hp), jnp.float32)],            # carried h state
    )

    pred_p, hfin_p = pl.pallas_call(
        functools.partial(_decoder_seq_kernel, hp=hp),
        grid_spec=grid_spec,
        out_shape=(
            jax.ShapeDtypeStruct((T * bp, op), jnp.float32),
            jax.ShapeDtypeStruct((bp, hp), jnp.float32),
        ),
        compiler_params=pltpu.CompilerParams(
            dimension_semantics=("arbitrary",)),                       # sequential recurrence
    )(x_in, h0_p, prep["w_big"], prep["w_fch"], prep["b_big"])

    preds = pred_p.reshape(T, bp, op)[:, :B, :out_dim]
    h_fin = hfin_p[None, :B, :hid_dim]
    return preds, h_fin


decoder_decode = jax.jit(_decode_impl,
                         static_argnames=("emb_dim", "hid_dim", "out_dim"))


def decoder_forward(prep, x, h, context, *, emb_dim, hid_dim, out_dim):
    """Single-step forward matching the PyTorch module: (x, h, context) -> (pred, h)."""
    preds, h_new = decoder_decode(prep, x[None, :], h, context,
                                  emb_dim=emb_dim, hid_dim=hid_dim, out_dim=out_dim)
    return preds[0], h_new


# ---------------------------------------------------------------------------
# Pure-JAX f32 reference mirroring the PyTorch module (eval-mode dropout).
# ---------------------------------------------------------------------------
def decoder_forward_ref(params, x, h, context):
    embedded = jnp.take(params["embedding"], x, axis=0)[None]     # (1, B, E)
    emb_con = jnp.concatenate([embedded, context], axis=2)        # (1, B, E+H)

    xt = emb_con[0]
    ht = h[0]
    gx = xt @ params["w_ih"].T + params["b_ih"]
    gh = ht @ params["w_hh"].T + params["b_hh"]
    H = ht.shape[-1]
    r = jax.nn.sigmoid(gx[:, :H] + gh[:, :H])
    z = jax.nn.sigmoid(gx[:, H:2 * H] + gh[:, H:2 * H])
    n = jnp.tanh(gx[:, 2 * H:] + r * gh[:, 2 * H:])
    h_new = ((1.0 - z) * n + z * ht)[None]

    output_con = jnp.concatenate([embedded, h_new, context], axis=2)[0]
    prediction = output_con @ params["w_fc"].T + params["b_fc"]
    return prediction, h_new


def decoder_decode_ref(params, tokens, h0, context):
    preds = []
    h = h0
    for t in range(tokens.shape[0]):
        p, h = decoder_forward_ref(params, tokens[t], h, context)
        preds.append(p)
    return jnp.stack(preds, axis=0), h


if __name__ == "__main__":
    OUT_DIM, EMB_DIM, HID_DIM = 64, 32, 32
    BATCH, SEQ = 2, 8

    key = jax.random.PRNGKey(0)
    kp, kx, kh, kc = jax.random.split(key, 4)

    params = init_decoder_params(kp, OUT_DIM, EMB_DIM, HID_DIM)
    # One-time weight preprocessing (kept off the per-step decode path).
    prep = jax.device_put(prepare_decoder_params(
        params, emb_dim=EMB_DIM, hid_dim=HID_DIM, out_dim=OUT_DIM))

    tokens = jax.random.randint(kx, (SEQ, BATCH), 0, OUT_DIM, dtype=jnp.int32)
    h0 = jax.random.normal(kh, (1, BATCH, HID_DIM), jnp.float32)
    context = jax.random.normal(kc, (1, BATCH, HID_DIM), jnp.float32)

    # --- Single-step forward (exact module semantics) ---
    pred1, h1 = decoder_forward(prep, tokens[0], h0, context,
                                emb_dim=EMB_DIM, hid_dim=HID_DIM, out_dim=OUT_DIM)
    jax.block_until_ready((pred1, h1))
    pred1_ref, h1_ref = decoder_forward_ref(params, tokens[0], h0, context)
    assert pred1.shape == (BATCH, OUT_DIM) and h1.shape == (1, BATCH, HID_DIM)
    assert jnp.allclose(pred1, pred1_ref, atol=2e-2, rtol=2e-2), \
        float(jnp.max(jnp.abs(pred1 - pred1_ref)))
    assert jnp.allclose(h1, h1_ref, atol=2e-2, rtol=2e-2), \
        float(jnp.max(jnp.abs(h1 - h1_ref)))

    # --- Weights-resident multi-step decode (grid over SEQ steps) ---
    preds, h_fin = decoder_decode(prep, tokens, h0, context,
                                  emb_dim=EMB_DIM, hid_dim=HID_DIM, out_dim=OUT_DIM)
    jax.block_until_ready((preds, h_fin))
    preds_ref, h_fin_ref = decoder_decode_ref(params, tokens, h0, context)
    assert preds.shape == (SEQ, BATCH, OUT_DIM) and h_fin.shape == (1, BATCH, HID_DIM)
    # bf16 MXU operands with the hidden state recycled through bf16 casts each step
    # => slightly relaxed tolerance vs. the pure-f32 reference over the sequence.
    assert jnp.allclose(preds, preds_ref, atol=5e-2, rtol=5e-2), \
        float(jnp.max(jnp.abs(preds - preds_ref)))
    assert jnp.allclose(h_fin, h_fin_ref, atol=5e-2, rtol=5e-2), \
        float(jnp.max(jnp.abs(h_fin - h_fin_ref)))

    print("KERNEL_OK")
</pallas_src>

<mosaic_0001>
module attributes {stable_mosaic.version = 11 : i64} {
  func.func @_decoder_seq_kernel(%arg0: i32, %arg1: memref<16x256xbf16, #tpu.memory_space<vmem>>, %arg2: memref<16x128xf32, #tpu.memory_space<vmem>>, %arg3: memref<384x640xbf16, #tpu.memory_space<vmem>>, %arg4: memref<128x128xbf16, #tpu.memory_space<vmem>>, %arg5: memref<1x640xf32, #tpu.memory_space<vmem>>, %arg6: memref<16x128xf32, #tpu.memory_space<vmem>>, %arg7: memref<16x128xf32, #tpu.memory_space<vmem>>, %arg8: memref<16x128xf32, #tpu.memory_space<vmem>>) attributes {dimension_semantics = [#tpu.dimension_semantics<arbitrary>], iteration_bounds = array<i64: 1>, scalar_prefetch = 0 : i64, scratch_operands = 1 : i64, tpu.core_type = #tpu.core_type<tc>, window_params = [{transform_indices = @transform_0, window_bounds = array<i64: 16, 256>}, {pipeline_mode = #tpu.pipeline_mode<synchronous>, transform_indices = @transform_1, window_bounds = array<i64: 16, 128>}, {pipeline_mode = #tpu.pipeline_mode<synchronous>, transform_indices = @transform_2, window_bounds = array<i64: 384, 640>}, {pipeline_mode = #tpu.pipeline_mode<synchronous>, transform_indices = @transform_3, window_bounds = array<i64: 128, 128>}, {pipeline_mode = #tpu.pipeline_mode<synchronous>, transform_indices = @transform_4, window_bounds = array<i64: 1, 640>}, {transform_indices = @transform_5, window_bounds = array<i64: 16, 128>}, {pipeline_mode = #tpu.pipeline_mode<synchronous>, transform_indices = @transform_6, window_bounds = array<i64: 16, 128>}]} {
    %c0_i32 = arith.constant 0 : i32
    %0 = arith.cmpi eq, %arg0, %c0_i32 : i32
    %1 = arith.extui %0 : i1 to i32
    %c0_i32_0 = arith.constant 0 : i32
    %2 = arith.cmpi ne, %1, %c0_i32_0 : i32
    scf.if %2 {
      %c0_20 = arith.constant 0 : index
      %c0_21 = arith.constant 0 : index
      %44 = vector.load %arg2[%c0_20, %c0_21] : memref<16x128xf32, #tpu.memory_space<vmem>>, vector<16x128xf32>
      %c0_22 = arith.constant 0 : index
      %c0_23 = arith.constant 0 : index
      %45 = vector.load %arg8[%c0_22, %c0_23] : memref<16x128xf32, #tpu.memory_space<vmem>>, vector<16x128xf32>
      tpu.vector_store %arg8[%c0_22, %c0_23], %44 {strides = array<i32>} : memref<16x128xf32, #tpu.memory_space<vmem>>, vector<16x128xf32>,
    } else {
    }
    %c0 = arith.constant 0 : index
    %c0_1 = arith.constant 0 : index
    %3 = vector.load %arg8[%c0, %c0_1] : memref<16x128xf32, #tpu.memory_space<vmem>>, vector<16x128xf32>
    %c0_2 = arith.constant 0 : index
    %c0_3 = arith.constant 0 : index
    %4 = vector.load %arg1[%c0_2, %c0_3] : memref<16x256xbf16, #tpu.memory_space<vmem>>, vector<16x256xbf16>
    %5 = arith.truncf %3 : vector<16x128xf32> to vector<16x128xbf16>
    %6 = tpu.concatenate %4, %5 in 1 : vector<16x256xbf16>, vector<16x128xbf16> -> vector<16x384xbf16>
    %c0_4 = arith.constant 0 : index
    %c0_5 = arith.constant 0 : index
    %7 = vector.load %arg3[%c0_4, %c0_5] : memref<384x640xbf16, #tpu.memory_space<vmem>>, vector<384x640xbf16>
    %cst = arith.constant dense<0.000000e+00> : vector<16x640xf32>
    %8 = tpu.matmul %6, %7, %cst {dimension_numbers = #tpu.dot_dimension_numbers<[1], [0], [0], [1], [0, 0, 1, 1], [], []>} : vector<16x384xbf16>, vector<384x640xbf16>, vector<16x640xf32> -> vector<16x640xf32>
    %c0_6 = arith.constant 0 : index
    %c0_7 = arith.constant 0 : index
    %9 = vector.load %arg5[%c0_6, %c0_7] : memref<1x640xf32, #tpu.memory_space<vmem>>, vector<1x640xf32>
    %10 = vector.broadcast %9 : vector<1x640xf32> to vector<16x640xf32>
    %11 = arith.addf %8, %10 : vector<16x640xf32>
    %12 = vector.extract_strided_slice %11 {offsets = [0, 0], sizes = [16, 128], strides = [1, 1]} : vector<16x640xf32> to vector<16x128xf32>
    %13 = arith.negf %12 : vector<16x128xf32>
    %14 = math.exp %13 : vector<16x128xf32>
    %cst_8 = arith.constant 1.000000e+00 : f32
    %15 = vector.broadcast %cst_8 : f32 to vector<16x128xf32>
    %16 = arith.addf %15, %14 : vector<16x128xf32>
    %17 = arith.divf %15, %16 : vector<16x128xf32>
    %18 = vector.extract_strided_slice %11 {offsets = [0, 128], sizes = [16, 128], strides = [1, 1]} : vector<16x640xf32> to vector<16x128xf32>
    %19 = arith.negf %18 : vector<16x128xf32>
    %20 = math.exp %19 : vector<16x128xf32>
    %cst_9 = arith.constant 1.000000e+00 : f32
    %21 = vector.broadcast %cst_9 : f32 to vector<16x128xf32>
    %22 = arith.addf %21, %20 : vector<16x128xf32>
    %23 = arith.divf %21, %22 : vector<16x128xf32>
    %24 = vector.extract_strided_slice %11 {offsets = [0, 256], sizes = [16, 128], strides = [1, 1]} : vector<16x640xf32> to vector<16x128xf32>
    %25 = vector.extract_strided_slice %11 {offsets = [0, 384], sizes = [16, 128], strides = [1, 1]} : vector<16x640xf32> to vector<16x128xf32>
    %26 = arith.mulf %17, %25 : vector<16x128xf32>
    %27 = arith.addf %24, %26 : vector<16x128xf32>
    %28 = math.tanh %27 : vector<16x128xf32>
    %cst_10 = arith.constant 1.000000e+00 : f32
    %29 = vector.broadcast %cst_10 : f32 to vector<16x128xf32>
    %30 = arith.subf %29, %23 : vector<16x128xf32>
    %31 = arith.mulf %30, %28 : vector<16x128xf32>
    %32 = arith.mulf %23, %3 : vector<16x128xf32>
    %33 = arith.addf %31, %32 : vector<16x128xf32>
    %34 = vector.extract_strided_slice %11 {offsets = [0, 512], sizes = [16, 128], strides = [1, 1]} : vector<16x640xf32> to vector<16x128xf32>
    %35 = arith.truncf %33 : vector<16x128xf32> to vector<16x128xbf16>
    %c0_11 = arith.constant 0 : index
    %c0_12 = arith.constant 0 : index
    %36 = vector.load %arg4[%c0_11, %c0_12] : memref<128x128xbf16, #tpu.memory_space<vmem>>, vector<128x128xbf16>
    %cst_13 = arith.constant dense<0.000000e+00> : vector<16x128xf32>
    %37 = tpu.matmul %35, %36, %cst_13 {dimension_numbers = #tpu.dot_dimension_numbers<[1], [0], [0], [1], [0, 0, 1, 1], [], []>} : vector<16x128xbf16>, vector<128x128xbf16>, vector<16x128xf32> -> vector<16x128xf32>
    %38 = arith.addf %34, %37 : vector<16x128xf32>
    %c0_14 = arith.constant 0 : index
    %c0_15 = arith.constant 0 : index
    %39 = vector.load %arg6[%c0_14, %c0_15] : memref<16x128xf32, #tpu.memory_space<vmem>>, vector<16x128xf32>
    tpu.vector_store %arg6[%c0_14, %c0_15], %38 {strides = array<i32>} : memref<16x128xf32, #tpu.memory_space<vmem>>, vector<16x128xf32>,
    %c0_16 = arith.constant 0 : index
    %c0_17 = arith.constant 0 : index
    %40 = vector.load %arg8[%c0_16, %c0_17] : memref<16x128xf32, #tpu.memory_space<vmem>>, vector<16x128xf32>
    tpu.vector_store %arg8[%c0_16, %c0_17], %33 {strides = array<i32>} : memref<16x128xf32, #tpu.memory_space<vmem>>, vector<16x128xf32>,
    %c0_i32_18 = arith.constant 0 : i32
    %41 = arith.cmpi eq, %arg0, %c0_i32_18 : i32
    %42 = arith.extui %41 : i1 to i32
    %c0_i32_19 = arith.constant 0 : i32
    %43 = arith.cmpi ne, %42, %c0_i32_19 : i32
    scf.if %43 {
      %c0_20 = arith.constant 0 : index
      %c0_21 = arith.constant 0 : index
      %44 = vector.load %arg7[%c0_20, %c0_21] : memref<16x128xf32, #tpu.memory_space<vmem>>, vector<16x128xf32>
      tpu.vector_store %arg7[%c0_20, %c0_21], %33 {strides = array<i32>} : memref<16x128xf32, #tpu.memory_space<vmem>>, vector<16x128xf32>,
    } else {
    }
    return
  }
  func.func @transform_0(%arg0: i32) -> (i32, i32) {
    %c0_i32 = arith.constant 0 : i32
    %c0_i32_0 = arith.constant 0 : i32
    return %arg0, %c0_i32 : i32, i32
  }
  func.func @transform_1(%arg0: i32) -> (i32, i32) {
    %c0_i32 = arith.constant 0 : i32
    %c0_i32_0 = arith.constant 0 : i32
    %c0_i32_1 = arith.constant 0 : i32
    return %c0_i32, %c0_i32_0 : i32, i32
  }
  func.func @transform_2(%arg0: i32) -> (i32, i32) {
    %c0_i32 = arith.constant 0 : i32
    %c0_i32_0 = arith.constant 0 : i32
    %c0_i32_1 = arith.constant 0 : i32
    return %c0_i32, %c0_i32_0 : i32, i32
  }
  func.func @transform_3(%arg0: i32) -> (i32, i32) {
    %c0_i32 = arith.constant 0 : i32
    %c0_i32_0 = arith.constant 0 : i32
    %c0_i32_1 = arith.constant 0 : i32
    return %c0_i32, %c0_i32_0 : i32, i32
  }
  func.func @transform_4(%arg0: i32) -> (i32, i32) {
    %c0_i32 = arith.constant 0 : i32
    %c0_i32_0 = arith.constant 0 : i32
    %c0_i32_1 = arith.constant 0 : i32
    return %c0_i32, %c0_i32_0 : i32, i32
  }
  func.func @transform_5(%arg0: i32) -> (i32, i32) {
    %c0_i32 = arith.constant 0 : i32
    %c0_i32_0 = arith.constant 0 : i32
    return %arg0, %c0_i32 : i32, i32
  }
  func.func @transform_6(%arg0: i32) -> (i32, i32) {
    %c0_i32 = arith.constant 0 : i32
    %c0_i32_0 = arith.constant 0 : i32
    %c0_i32_1 = arith.constant 0 : i32
    return %c0_i32, %c0_i32_0 : i32, i32
  }
}

</mosaic_0001>

<bundles_post_ra>
// kernel: _decode_impl.1
= control target key start
LH: loop header
LB: loop body
LE: loop exit
PB: predicated region body
PF: predicated region fallthrough
CT: control target
= control target key end

     0   :  { %12 = vsyncpa [#allocation4], 0  ;;  %s1714_s21 = smov [#allocation3]   ;;  %s1866_s0 = inlined_call_operand.vmem [shape: bf16[16,256], index: 0, kind: input, shape index: {}]   ;;  %s1867_s1 = inlined_call_operand.vmem [shape: f32[16,128], index: 1, kind: input, shape index: {}]   ;;  %s1868_s2 = inlined_call_operand.hbm [shape: bf16[384,640], index: 2, kind: input, shape index: {}]   ;;  %s1869_s3 = inlined_call_operand.vmem [shape: bf16[128,128], index: 3, kind: input, shape index: {}]   ;;  %s1870_s4 = inlined_call_operand.vmem [shape: f32[1,640], index: 4, kind: input, shape index: {}]   ;;  %s1871_s5 = inlined_call_operand.vmem [shape: f32[16,128], index: 5, kind: output, shape index: {0}]   ;;  %s1872_s6 = inlined_call_operand.vmem [shape: f32[16,128], index: 6, kind: output, shape index: {1}]  }
   0x1   :  { %s22_s22 = sshll.u32 %s1714_s21, 4  ;;  %s23_s22 = int_to_ptr.vmem [resolvable:$true] %s22_s22 }
   0x2   :  { %s1700_s23 = scalar_lea.vmem %s23_s22, 15360  ;;  %p1705_p1 = scmp.lt.s32.totalorder %s23_s22, %s23_s22 }
   0x3   :  { %p1701_p0 = scmp.ne.s32.totalorder %s23_s22, %s1700_s23  ;;  %p1706_p2 = scmp.lt.s32.totalorder %s1700_s23, %s1700_s23 }
   0x5   :  { %p1707_p3 = por %p1706_p2, %p1705_p1 }
   0x7   :  { %p1708_p4 = pnand %p1707_p3, %p1701_p0 }
   0x9   :  { %1711 = shalt.err (!%p1708_p4)
}
   0xa   :  { %s1715_s24 = smov 320   ;;  %s1716_s25 = smov 20  }
   0xb   :  { %28 = dma.hbm_to_vmem [thread:$0]  %s1868_s2, 15360, %s23_s22, [#allocation4], %s1715_s24, %s1715_s24, %s1716_s25  }
   0xc   :  { %1712 = dma.done.wait [#allocation4], 15360  }
   0xd   :  { %1713 = vsyncadd [#allocation4], 4294951936  ;;  %v1717_v0 = vmov 0   ;;  %v1493_v1 = vld [vmem:[#allocation3 + $0x11c] ss:$20 sps:$4 sm:$0xff]   ;;  %v1762_v33 = vld [vmem:[%s1867_s1] sm:$0xff] }
   0xe   :  { %930 = vmatprep.mubr.bf16.mxu1 %v1717_v0  ;;  %v1495_v2 = vld [vmem:[#allocation3 + $0x39c] ss:$20 sps:$4 sm:$0xff]   ;;  %855 = vmatprep.subr.bf16.mxu0 %v1493_v1  ;;  %v1497_v3 = vld [vmem:[#allocation3 + $0x118] ss:$20 sps:$4 sm:$0xff]   ;;  %v1499_v5 = vld [vmem:[#allocation3 + $0xf4] ss:$20 sps:$4 sm:$0xff]  }
   0xf   :  { %v1498_v4 = vld [vmem:[#allocation3 + $0x398] ss:$20 sps:$4 sm:$0xff]   ;;  %898 = vmatprep.subr.bf16.mxu1 %v1495_v2  ;;  %856 = vmatpush1.bf16.msra.mxu0 %v1497_v3  ;;  %v1501_v6 = vld [vmem:[#allocation3 + $0x374] ss:$20 sps:$4 sm:$0xff]   ;;  %v1503_v7 = vld [vmem:[#allocation3 + $0xf0] ss:$20 sps:$4 sm:$0xff]  }
  0x10   :  { %899 = vmatpush1.bf16.msra.mxu1 %v1498_v4  ;;  %857 = vmatprep.subr.bf16.mxu0 %v1499_v5  ;;  %v1504_v8 = vld [vmem:[#allocation3 + $0x370] ss:$20 sps:$4 sm:$0xff]   ;;  %v1505_v9 = vld [vmem:[#allocation3 + $0xcc] ss:$20 sps:$4 sm:$0xff]   ;;  %v1509_v11 = vld [vmem:[#allocation3 + $0xc8] ss:$20 sps:$4 sm:$0xff]  }
  0x11   :  { %900 = vmatprep.subr.bf16.mxu1 %v1501_v6  ;;  %v1507_v10 = vld [vmem:[#allocation3 + $0x34c] ss:$20 sps:$4 sm:$0xff]   ;;  %v1510_v12 = vld [vmem:[#allocation3 + $0x348] ss:$20 sps:$4 sm:$0xff]   ;;  %v1511_v13 = vld [vmem:[#allocation3 + $0xa4] ss:$20 sps:$4 sm:$0xff]  }
  0x12   :  { %v1513_v14 = vld [vmem:[#allocation3 + $0x324] ss:$20 sps:$4 sm:$0xff]   ;;  %v1515_v15 = vld [vmem:[#allocation3 + $0xa0] ss:$20 sps:$4 sm:$0xff]   ;;  %v1517_v17 = vld [vmem:[#allocation3 + $0x7c] ss:$20 sps:$4 sm:$0xff]  }
  0x13   :  { %858 = vmatpush1.bf16.msra.mxu0 %v1503_v7  ;;  %v1516_v16 = vld [vmem:[#allocation3 + $0x320] ss:$20 sps:$4 sm:$0xff]   ;;  %v1519_v18 = vld [vmem:[#allocation3 + $0x2fc] ss:$20 sps:$4 sm:$0xff]   ;;  %v1521_v19 = vld [vmem:[#allocation3 + $0x78] ss:$20 sps:$4 sm:$0xff]  }
  0x14   :  { %901 = vmatpush1.bf16.msra.mxu1 %v1504_v8  ;;  %859 = vmatprep.subr.bf16.mxu0 %v1505_v9  ;;  %v1522_v20 = vld [vmem:[#allocation3 + $0x2f8] ss:$20 sps:$4 sm:$0xff]   ;;  %v1523_v21 = vld [vmem:[#allocation3 + $0x54] ss:$20 sps:$4 sm:$0xff]   ;;  %v1527_v23 = vld [vmem:[#allocation3 + $0x50] ss:$20 sps:$4 sm:$0xff]  }
  0x15   :  { %902 = vmatprep.subr.bf16.mxu1 %v1507_v10  ;;  %v1525_v22 = vld [vmem:[#allocation3 + $0x2d4] ss:$20 sps:$4 sm:$0xff]   ;;  %v1528_v24 = vld [vmem:[#allocation3 + $0x2d0] ss:$20 sps:$4 sm:$0xff]   ;;  %v1529_v25 = vld [vmem:[#allocation3 + $0x2c] ss:$20 sps:$4 sm:$0xff]  }
  0x16   :  { %v1531_v26 = vld [vmem:[#allocation3 + $0x2ac] ss:$20 sps:$4 sm:$0xff]   ;;  %v1533_v27 = vld [vmem:[#allocation3 + $0x28] ss:$20 sps:$4 sm:$0xff]   ;;  %v1535_v29 = vld [vmem:[#allocation3 + $0x4] ss:$20 sps:$4 sm:$0xff]  }
  0x17   :  { %860 = vmatpush1.bf16.msra.mxu0 %v1509_v11  ;;  %v1534_v28 = vld [vmem:[#allocation3 + $0x2a8] ss:$20 sps:$4 sm:$0xff]   ;;  %v1537_v30 = vld [vmem:[#allocation3 + $0x284] ss:$20 sps:$4 sm:$0xff]   ;;  %v1539_v31 = vld [vmem:[#allocation3] ss:$20 sps:$4 sm:$0xff]  }
  0x18   :  { %903 = vmatpush1.bf16.msra.mxu1 %v1510_v12  ;;  %861 = vmatprep.subr.bf16.mxu0 %v1511_v13  ;;  %v1540_v32 = vld [vmem:[#allocation3 + $0x280] ss:$20 sps:$4 sm:$0xff]   ;;  %v1767_v34 = vld [vmem:[%s1867_s1 + $0x8] sm:$0xff]  ;;  %v1541_v35 = vld [vmem:[#allocation3 + $0x25c] ss:$20 sps:$4 sm:$0xff]   ;;  %vm1719_vm0 = vmmov 0  }
  0x19   :  { %904 = vmatprep.subr.bf16.mxu1 %v1513_v14  ;;  %v1545_v36 = vld [vmem:[#allocation3 + $0x124] ss:$20 sps:$4 sm:$0xff]   ;;  %v1771_v37 = vpack.c.bf16 %v1767_v34, %v1762_v33  ;;  %v1543_v38 = vld [vmem:[#allocation3 + $0x120] ss:$20 sps:$4 sm:$0xff]   ;;  %v1551_v41 = vld [vmem:[#allocation3 + $0xfc] ss:$20 sps:$4 sm:$0xff]  }
  0x1a   :  { %v1546_v39 = vld [vmem:[#allocation3 + $0x258] ss:$20 sps:$4 sm:$0xff]   ;;  %v1547_v40 = vld [vmem:[#allocation3 + $0x234] ss:$20 sps:$4 sm:$0xff]   ;;  %v1552_v43 = vld [vmem:[#allocation3 + $0x230] ss:$20 sps:$4 sm:$0xff]  }
  0x1b   :  { %862 = vmatpush1.bf16.msra.mxu0 %v1515_v15  ;;  %v1549_v42 = vld [vmem:[#allocation3 + $0xf8] ss:$20 sps:$4 sm:$0xff]   ;;  %v1557_v45 = vld [vmem:[#allocation3 + $0xd4] ss:$20 sps:$4 sm:$0xff]   ;;  %v1555_v46 = vld [vmem:[#allocation3 + $0xd0] ss:$20 sps:$4 sm:$0xff]  }
  0x1c   :  { %905 = vmatpush1.bf16.msra.mxu1 %v1516_v16  ;;  %863 = vmatprep.subr.bf16.mxu0 %v1517_v17  ;;  %v1553_v44 = vld [vmem:[#allocation3 + $0x20c] ss:$20 sps:$4 sm:$0xff]   ;;  %v1558_v47 = vld [vmem:[#allocation3 + $0x208] ss:$20 sps:$4 sm:$0xff]   ;;  %v1559_v48 = vld [vmem:[#allocation3 + $0x1e4] ss:$20 sps:$4 sm:$0xff]  }
  0x1d   :  { %906 = vmatprep.subr.bf16.mxu1 %v1519_v18  ;;  %v1563_v49 = vld [vmem:[#allocation3 + $0xac] ss:$20 sps:$4 sm:$0xff]   ;;  %v1561_v50 = vld [vmem:[#allocation3 + $0xa8] ss:$20 sps:$4 sm:$0xff]   ;;  %v1569_v54 = vld [vmem:[#allocation3 + $0x84] ss:$20 sps:$4 sm:$0xff]  }
  0x1e   :  { %v1564_v51 = vld [vmem:[#allocation3 + $0x1e0] ss:$20 sps:$4 sm:$0xff]   ;;  %v1777_v52 = vld [vmem:[%s1866_s0 + $0x4] ss:$8 sps:$4 sm:$0xff]   ;;  %v1565_v53 = vld [vmem:[#allocation3 + $0x1bc] ss:$20 sps:$4 sm:$0xff]  }
  0x1f   :  { %864 = vmatpush1.bf16.msra.mxu0 %v1521_v19  ;;  %887 = vmatprep.mubr.bf16.mxu0 %v1777_v52  ;;  %v1567_v55 = vld [vmem:[#allocation3 + $0x80] ss:$20 sps:$4 sm:$0xff]   ;;  %v1570_v56 = vld [vmem:[#allocation3 + $0x1b8] ss:$20 sps:$4 sm:$0xff]   ;;  %v1575_v58 = vld [vmem:[#allocation3 + $0x5c] ss:$20 sps:$4 sm:$0xff]  }
  0x20   :  { %907 = vmatpush1.bf16.msra.mxu1 %v1522_v20  ;;  %865 = vmatprep.subr.bf16.mxu0 %v1523_v21  ;;  %v1571_v57 = vld [vmem:[#allocation3 + $0x194] ss:$20 sps:$4 sm:$0xff]   ;;  %v1573_v59 = vld [vmem:[#allocation3 + $0x58] ss:$20 sps:$4 sm:$0xff]   ;;  %v1576_v60 = vld [vmem:[#allocation3 + $0x190] ss:$20 sps:$4 sm:$0xff]  }
  0x21   :  { %908 = vmatprep.subr.bf16.mxu1 %v1525_v22  ;;  %v1577_v61 = vld [vmem:[#allocation3 + $0x16c] ss:$20 sps:$4 sm:$0xff]   ;;  %v1581_v62 = vld [vmem:[#allocation3 + $0x34] ss:$20 sps:$4 sm:$0xff]   ;;  %v1579_v63 = vld [vmem:[#allocation3 + $0x30] ss:$20 sps:$4 sm:$0xff]  }
  0x22   :  { %v1582_v1 = vld [vmem:[#allocation3 + $0x168] ss:$20 sps:$4 sm:$0xff]   ;;  %v1583_v2 = vld [vmem:[#allocation3 + $0x144] ss:$20 sps:$4 sm:$0xff]   ;;  %v1587_v3 = vld [vmem:[#allocation3 + $0xc] ss:$20 sps:$4 sm:$0xff]  }
  0x23   :  { %866 = vmatpush1.bf16.msra.mxu0 %v1527_v23  ;;  %v1585_v4 = vld [vmem:[#allocation3 + $0x8] ss:$20 sps:$4 sm:$0xff]   ;;  %v1588_v5 = vld [vmem:[#allocation3 + $0x140] ss:$20 sps:$4 sm:$0xff]   ;;  %v1594_v6 = vld [vmem:[#allocation3 + $0x264] ss:$20 sps:$4 sm:$0xff]  }
  0x24   :  { %909 = vmatpush1.bf16.msra.mxu1 %v1528_v24  ;;  %867 = vmatprep.subr.bf16.mxu0 %v1529_v25  ;;  %v1597_v7 = vld [vmem:[#allocation3 + $0x3a4] ss:$20 sps:$4 sm:$0xff]   ;;  %v1784_v8 = vld [vmem:[%s1866_s0] ss:$8 sps:$4 sm:$0xff]   ;;  %v1600_v11 = vld [vmem:[#allocation3 + $0x23c] ss:$20 sps:$4 sm:$0xff]  }
  0x25   :  { %910 = vmatprep.subr.bf16.mxu1 %v1531_v26  ;;  %v1592_v9 = vld [vmem:[#allocation3 + $0x260] ss:$20 sps:$4 sm:$0xff]   ;;  %v1603_v12 = vld [vmem:[#allocation3 + $0x37c] ss:$20 sps:$4 sm:$0xff]   ;;  %v1598_v13 = vld [vmem:[#allocation3 + $0x238] ss:$20 sps:$4 sm:$0xff]  }
  0x26   :  { %v1595_v10 = vld [vmem:[#allocation3 + $0x3a0] ss:$20 sps:$4 sm:$0xff]   ;;  %v1601_v14 = vld [vmem:[#allocation3 + $0x378] ss:$20 sps:$4 sm:$0xff]   ;;  %v1604_v17 = vld [vmem:[#allocation3 + $0x210] ss:$20 sps:$4 sm:$0xff]  }
  0x27   :  { %868 = vmatpush1.bf16.msra.mxu0 %v1533_v27  ;;  %v1606_v15 = vld [vmem:[#allocation3 + $0x214] ss:$20 sps:$4 sm:$0xff]   ;;  %v1607_v18 = vld [vmem:[#allocation3 + $0x350] ss:$20 sps:$4 sm:$0xff]   ;;  %v1612_v19 = vld [vmem:[#allocation3 + $0x1ec] ss:$20 sps:$4 sm:$0xff]  }
  0x28   :  { %911 = vmatpush1.bf16.msra.mxu1 %v1534_v28  ;;  %869 = vmatprep.subr.bf16.mxu0 %v1535_v29  ;;  %v1609_v16 = vld [vmem:[#allocation3 + $0x354] ss:$20 sps:$4 sm:$0xff]   ;;  %v1615_v20 = vld [vmem:[#allocation3 + $0x32c] ss:$20 sps:$4 sm:$0xff]   ;;  %v1618_v23 = vld [vmem:[#allocation3 + $0x1c4] ss:$20 sps:$4 sm:$0xff]  }
  0x29   :  { %912 = vmatprep.subr.bf16.mxu1 %v1537_v30  ;;  %v1610_v21 = vld [vmem:[#allocation3 + $0x1e8] ss:$20 sps:$4 sm:$0xff]   ;;  %v1621_v24 = vld [vmem:[#allocation3 + $0x304] ss:$20 sps:$4 sm:$0xff]   ;;  %v1616_v25 = vld [vmem:[#allocation3 + $0x1c0] ss:$20 sps:$4 sm:$0xff]  }
  0x2a   :  { %v1613_v22 = vld [vmem:[#allocation3 + $0x328] ss:$20 sps:$4 sm:$0xff]   ;;  %v1619_v26 = vld [vmem:[#allocation3 + $0x300] ss:$20 sps:$4 sm:$0xff]   ;;  %v1625_v29 = vld [vmem:[#allocation3 + $0x2d8] ss:$20 sps:$4 sm:$0xff]  }
  0x2b   :  { %870 = vmatpush1.bf16.msra.mxu0 %v1539_v31  ;;  %v1624_v27 = vld [vmem:[#allocation3 + $0x19c] ss:$20 sps:$4 sm:$0xff]   ;;  %v1630_v30 = vld [vmem:[#allocation3 + $0x174] ss:$20 sps:$4 sm:$0xff]  }
  0x2c   :  { %913 = vmatpush1.bf16.msra.mxu1 %v1540_v32  ;;  %871 = vmatprep.subr.bf16.mxu0 %v1541_v35  ;;  %v1627_v28 = vld [vmem:[#allocation3 + $0x2dc] ss:$20 sps:$4 sm:$0xff]   ;;  %v1633_v31 = vld [vmem:[#allocation3 + $0x2b4] ss:$20 sps:$4 sm:$0xff]  }
  0x2d   :  { %941 = vmatprep.subr.bf16.mxu1 %v1545_v36  ;;  %v1628_v32 = vld [vmem:[#allocation3 + $0x170] ss:$20 sps:$4 sm:$0xff]   ;;  %v1636_v36 = vld [vmem:[#allocation3 + $0x14c] ss:$20 sps:$4 sm:$0xff]  }
  0x2e   :  { %v1631_v35 = vld [vmem:[#allocation3 + $0x2b0] ss:$20 sps:$4 sm:$0xff]  }
  0x2f   :  { %931 = vmatmul.mubr.bf16.vlgmr.msra.gmra.mxu1 %v1771_v37  ;;  %872 = vmatpush2.bf16.msra.mxu0 %v1546_v39  ;;  %v1634_v39 = vld [vmem:[#allocation3 + $0x148] ss:$20 sps:$4 sm:$0xff]  }
  0x30   :  { %942 = vmatpush1.bf16.msra.mxu1 %v1543_v38  ;;  %873 = vmatprep.subr.bf16.mxu0 %v1547_v40  ;;  %v1639_v38 = vld [vmem:[#allocation3 + $0x28c] ss:$20 sps:$4 sm:$0xff]   ;;  %v1637_v40 = vld [vmem:[#allocation3 + $0x288] ss:$20 sps:$4 sm:$0xff]  }
  0x31   :  { %943 = vmatprep.subr.bf16.mxu1 %v1551_v41  ;;  %973 = vmatprep.mubr.bf16.mxu1 %v1777_v52  ;;  %v1640_v41 = vld [vmem:[#allocation3 + $0x268] ss:$20 sps:$4 sm:$0xff]  }
  0x33   :  { %874 = vmatpush2.bf16.msra.mxu0 %v1552_v43  ;;  %v1642_v43 = vld [vmem:[#allocation3 + $0x240] ss:$20 sps:$4 sm:$0xff]  }
  0x34   :  { %944 = vmatpush1.bf16.msra.mxu1 %v1549_v42  ;;  %875 = vmatprep.subr.bf16.mxu0 %v1553_v44  ;;  %v1641_v42 = vld [vmem:[#allocation3 + $0x128] ss:$20 sps:$4 sm:$0xff]   ;;  %v1643_v44 = vld [vmem:[#allocation3 + $0x100] ss:$20 sps:$4 sm:$0xff]  }
  0x35   :  { %945 = vmatprep.subr.bf16.mxu1 %v1557_v45  ;;  %v1644_v45 = vld [vmem:[#allocation3 + $0x3a8] ss:$20 sps:$4 sm:$0xff]  }
  0x37   :  { %876 = vmatpush2.bf16.msra.mxu0 %v1558_v47  ;;  %v1645_v47 = vld [vmem:[#allocation3 + $0x218] ss:$20 sps:$4 sm:$0xff]  }
  0x38   :  { %946 = vmatpush1.bf16.msra.mxu1 %v1555_v46  ;;  %877 = vmatprep.subr.bf16.mxu0 %v1559_v48  ;;  %v1718_v46 = vmov 0.0   ;;  %v1646_v48 = vld [vmem:[#allocation3 + $0xd8] ss:$20 sps:$4 sm:$0xff]  }
  0x39   :  { %947 = vmatprep.subr.bf16.mxu1 %v1563_v49  ;;  %v1647_v49 = vld [vmem:[#allocation3 + $0x380] ss:$20 sps:$4 sm:$0xff]  }
  0x3b   :  { %878 = vmatpush2.bf16.msra.mxu0 %v1564_v51  ;;  %v1649_v51 = vld [vmem:[#allocation3 + $0xb0] ss:$20 sps:$4 sm:$0xff]  }
  0x3c   :  { %948 = vmatpush1.bf16.msra.mxu1 %v1561_v50  ;;  %879 = vmatprep.subr.bf16.mxu0 %v1565_v53  ;;  %v1648_v50 = vld [vmem:[#allocation3 + $0x1f0] ss:$20 sps:$4 sm:$0xff]   ;;  %v1651_v53 = vld [vmem:[#allocation3 + $0x1c8] ss:$20 sps:$4 sm:$0xff]  }
  0x3d   :  { %949 = vmatprep.subr.bf16.mxu1 %v1569_v54  ;;  %v1652_v54 = vld [vmem:[#allocation3 + $0x88] ss:$20 sps:$4 sm:$0xff]  }
  0x3f   :  { %880 = vmatpush2.bf16.msra.mxu0 %v1570_v56  ;;  %v1654_v56 = vld [vmem:[#allocation3 + $0x1a0] ss:$20 sps:$4 sm:$0xff]  }
  0x40   :  { %950 = vmatpush1.bf16.msra.mxu1 %v1567_v55  ;;  %881 = vmatprep.subr.bf16.mxu0 %v1571_v57  ;;  %v1653_v55 = vld [vmem:[#allocation3 + $0x330] ss:$20 sps:$4 sm:$0xff]   ;;  %v1655_v57 = vld [vmem:[#allocation3 + $0x60] ss:$20 sps:$4 sm:$0xff]  }
  0x41   :  { %951 = vmatprep.subr.bf16.mxu1 %v1575_v58  ;;  %v1656_v58 = vld [vmem:[#allocation3 + $0x308] ss:$20 sps:$4 sm:$0xff]  }
  0x43   :  { %882 = vmatpush2.bf16.msra.mxu0 %v1576_v60  ;;  %v1658_v60 = vld [vmem:[#allocation3 + $0x38] ss:$20 sps:$4 sm:$0xff]  }
  0x44   :  { %952 = vmatpush1.bf16.msra.mxu1 %v1573_v59  ;;  %883 = vmatprep.subr.bf16.mxu0 %v1577_v61  ;;  %v1657_v59 = vld [vmem:[#allocation3 + $0x178] ss:$20 sps:$4 sm:$0xff]   ;;  %v1659_v61 = vld [vmem:[#allocation3 + $0x2e0] ss:$20 sps:$4 sm:$0xff]  }
  0x45   :  { %953 = vmatprep.subr.bf16.mxu1 %v1581_v62  ;;  %v1660_v62 = vld [vmem:[#allocation3 + $0x150] ss:$20 sps:$4 sm:$0xff]  }
  0x47   :  { %884 = vmatpush2.bf16.msra.mxu0 %v1582_v1  ;;  %v1662_v1 = vld [vmem:[#allocation3 + $0x2b8] ss:$20 sps:$4 sm:$0xff]  }
  0x48   :  { %954 = vmatpush1.bf16.msra.mxu1 %v1579_v63  ;;  %885 = vmatprep.subr.bf16.mxu0 %v1583_v2  ;;  %v1661_v63 = vld [vmem:[#allocation3 + $0x10] ss:$20 sps:$4 sm:$0xff]  }
  0x49   :  { %955 = vmatprep.subr.bf16.mxu1 %v1587_v3  ;;  %v1663_v2 = vld [vmem:[#allocation3 + $0x290] ss:$20 sps:$4 sm:$0xff]   ;;  %v1664_v3 = vld [vmem:[%s1869_s3 + $0x38] sm:$0xff]  }
  0x4b   :  { %886 = vmatpush2.bf16.msra.mxu0 %v1588_v5  ;;  %v1666_v5 = vld [vmem:[%s1869_s3 + $0x28] sm:$0xff]  }
  0x4c   :  { %956 = vmatpush1.bf16.msra.mxu1 %v1585_v4  ;;  %984 = vmatprep.subr.bf16.mxu0 %v1597_v7  ;;  %v1665_v4 = vld [vmem:[%s1869_s3 + $0x30] sm:$0xff]  }
  0x4d   :  { %957 = vmatprep.subr.bf16.mxu1 %v1594_v6  ;;  %v1668_v6 = vld [vmem:[%s1869_s3 + $0x18] sm:$0xff]   ;;  %v1669_v7 = vld [vmem:[%s1869_s3 + $0x10] sm:$0xff]  }
  0x4e   :  { %888 = vmatmul.mubr.bf16.vlgmr.msra.gmra.mxu0 %v1784_v8 }
  0x4f   :  { %985 = vmatpush1.bf16.msra.mxu0 %v1595_v10  ;;  %1016 = vmatprep.mubr.bf16.mxu0 %v1717_v0  ;;  %v1622_v0 = vld [vmem:[#allocation3 + $0x198] ss:$20 sps:$4 sm:$0xff]   ;;  %v206_v10 = vlaneseq }
  0x50   :  { %958 = vmatpush2.bf16.msra.mxu1 %v1592_v9  ;;  %986 = vmatprep.subr.bf16.mxu0 %v1603_v12  ;;  %v1671_v9 = vld [vmem:[%s1869_s3] sm:$0xff]  }
  0x51   :  { %959 = vmatprep.subr.bf16.mxu1 %v1600_v11  ;;  %v1835_v11 = vshrl.u32 %v206_v10, 7 }
  0x53   :  { %987 = vmatpush1.bf16.msra.mxu0 %v1601_v14  ;;  %v208_v12 = vsub.s32 0, %v1835_v11 }
  0x54   :  { %960 = vmatpush2.bf16.msra.mxu1 %v1598_v13  ;;  %988 = vmatprep.subr.bf16.mxu0 %v1609_v16  ;;  %v1841_v13 = vld [vmem:[%s1870_s4] sm:$0x1f]  ;;  %v212_v16 = vsub.s32 1, %v1835_v11 }
  0x55   :  { %961 = vmatprep.subr.bf16.mxu1 %v1606_v15  ;;  %v209_v14 = vrot.slane %v1841_v13, %v208_v12 }
  0x57   :  { %989 = vmatpush1.bf16.msra.mxu0 %v1607_v18 }
  0x58   :  { %962 = vmatpush2.bf16.msra.mxu1 %v1604_v17  ;;  %990 = vmatprep.subr.bf16.mxu0 %v1615_v20  ;;  %v213_v20 = vrot.slane %v1841_v13, %v212_v16 }
  0x59   :  { %963 = vmatprep.subr.bf16.mxu1 %v1612_v19 }
  0x5b   :  { %991 = vmatpush1.bf16.msra.mxu0 %v1613_v22 }
  0x5c   :  { %964 = vmatpush2.bf16.msra.mxu1 %v1610_v21  ;;  %992 = vmatprep.subr.bf16.mxu0 %v1621_v24 }
  0x5d   :  { %965 = vmatprep.subr.bf16.mxu1 %v1618_v23 }
  0x5f   :  { %993 = vmatpush1.bf16.msra.mxu0 %v1619_v26 }
  0x60   :  { %966 = vmatpush2.bf16.msra.mxu1 %v1616_v25  ;;  %994 = vmatprep.subr.bf16.mxu0 %v1627_v28 }
  0x61   :  { %967 = vmatprep.subr.bf16.mxu1 %v1624_v27 }
  0x63   :  { %995 = vmatpush1.bf16.msra.mxu0 %v1625_v29 }
  0x64   :  { %968 = vmatpush2.bf16.msra.mxu1 %v1622_v0  ;;  %996 = vmatprep.subr.bf16.mxu0 %v1633_v31 }
  0x65   :  { %969 = vmatprep.subr.bf16.mxu1 %v1630_v30 }
  0x67   :  { %997 = vmatpush1.bf16.msra.mxu0 %v1631_v35 }
  0x68   :  { %970 = vmatpush2.bf16.msra.mxu1 %v1628_v32  ;;  %998 = vmatprep.subr.bf16.mxu0 %v1639_v38 }
  0x69   :  { %971 = vmatprep.subr.bf16.mxu1 %v1636_v36 }
  0x6b   :  { %999 = vmatpush1.bf16.msra.mxu0 %v1637_v40 }
  0x6c   :  { %972 = vmatpush2.bf16.msra.mxu1 %v1634_v39  ;;  %1407 = vmatprep.subr.bf16.mxu0 %v1640_v41 }
  0x6d   :  { %1447 = vmatprep.subr.bf16.mxu1 %v1718_v46 }
  0x6e   :  { %1017 = vmatmul.mubr.bf16.vlgmr.msra.gmra.mxu0 %v1771_v37 }
  0x6f   :  { %974 = vmatmul.mubr.bf16.vlgmr.msra.gmra.mxu1 %v1784_v8  ;;  %1059 = vmatprep.mubr.bf16.mxu0 %v1777_v52  ;;  %v1650_v52 = vld [vmem:[#allocation3 + $0x358] ss:$20 sps:$4 sm:$0xff]  }
  0x70   :  { %1408 = vmatpush3.bf16.msra.mxu0 %v1641_v42  ;;  %1448 = vmatpush3.bf16.msra.mxu1 %v1644_v45 }
  0x71   :  { %1409 = vmatprep.subr.bf16.mxu0 %v1642_v43  ;;  %1449 = vmatprep.subr.bf16.mxu1 %v1718_v46  ;;  %v216_v43 = vsub.s32 2, %v1835_v11 }
  0x72   :  { %1463 = vmatprep.mubr.msk.bf16.mxu1 %vm1719_vm0, %v1718_v46 }
  0x74   :  { %1410 = vmatpush3.bf16.msra.mxu0 %v1643_v44  ;;  %1450 = vmatpush3.bf16.msra.mxu1 %v1647_v49  ;;  %v220_v44 = vsub.s32 3, %v1835_v11 }
  0x75   :  { %1411 = vmatprep.subr.bf16.mxu0 %v1645_v47  ;;  %1451 = vmatprep.subr.bf16.mxu1 %v1718_v46 }
  0x76   :  { %v221_v47 = vrot.slane %v1841_v13, %v220_v44 }
  0x78   :  { %1412 = vmatpush3.bf16.msra.mxu0 %v1646_v48  ;;  %1452 = vmatpush3.bf16.msra.mxu1 %v1650_v52 }
  0x79   :  { %1413 = vmatprep.subr.bf16.mxu0 %v1648_v50  ;;  %1453 = vmatprep.subr.bf16.mxu1 %v1718_v46 }
  0x7c   :  { %1414 = vmatpush3.bf16.msra.mxu0 %v1649_v51  ;;  %1454 = vmatpush3.bf16.msra.mxu1 %v1653_v55 }
  0x7d   :  { %1415 = vmatprep.subr.bf16.mxu0 %v1651_v53  ;;  %1455 = vmatprep.subr.bf16.mxu1 %v1718_v46 }
  0x80   :  { %1416 = vmatpush3.bf16.msra.mxu0 %v1652_v54  ;;  %1456 = vmatpush3.bf16.msra.mxu1 %v1656_v58 }
  0x81   :  { %1417 = vmatprep.subr.bf16.mxu0 %v1654_v56  ;;  %1457 = vmatprep.subr.bf16.mxu1 %v1718_v46 }
  0x84   :  { %1418 = vmatpush3.bf16.msra.mxu0 %v1655_v57  ;;  %1458 = vmatpush3.bf16.msra.mxu1 %v1659_v61 }
  0x85   :  { %1419 = vmatprep.subr.bf16.mxu0 %v1657_v59  ;;  %1459 = vmatprep.subr.bf16.mxu1 %v1718_v46 }
  0x88   :  { %1420 = vmatpush3.bf16.msra.mxu0 %v1658_v60  ;;  %1460 = vmatpush3.bf16.msra.mxu1 %v1662_v1 }
  0x89   :  { %1421 = vmatprep.subr.bf16.mxu0 %v1660_v62  ;;  %1461 = vmatprep.subr.bf16.mxu1 %v1718_v46 }
  0x8c   :  { %1422 = vmatpush3.bf16.msra.mxu0 %v1661_v63  ;;  %1462 = vmatpush3.bf16.msra.mxu1 %v1663_v2 }
  0x8d   :  { %1467 = vmatprep.subr.bf16.mxu0 %v1718_v46 }
  0x8f   :  { %1060 = vmatmul.mubr.bf16.vlgmr.msra.gmra.mxu0 %v1784_v8  ;;  %1464 = vmatmul.mubr.bf16.vlgmr.msra.gmra.mxu1 %v1771_v37  ;;  %v1667_v37 = vld [vmem:[%s1869_s3 + $0x20] sm:$0xff]   ;;  %v1670_v8 = vld [vmem:[%s1869_s3 + $0x8] sm:$0xff]  }
  0x90   :  { %1483 = vmatprep.mubr.msk.bf16.mxu0 %vm1719_vm0, %v1718_v46  ;;  %1468 = vmatpush3.bf16.msra.mxu0 %v1664_v3 }
  0x91   :  { %1469 = vmatprep.subr.bf16.mxu0 %v1718_v46 }
  0x94   :  { %1470 = vmatpush3.bf16.msra.mxu0 %v1665_v4 }
  0x95   :  { %1471 = vmatprep.subr.bf16.mxu0 %v1718_v46 }
  0x98   :  { %1472 = vmatpush3.bf16.msra.mxu0 %v1666_v5 }
  0x99   :  { %1473 = vmatprep.subr.bf16.mxu0 %v1718_v46 }
  0x9c   :  { %1474 = vmatpush3.bf16.msra.mxu0 %v1667_v37 }
  0x9d   :  { %1475 = vmatprep.subr.bf16.mxu0 %v1718_v46 }
  0xa0   :  { %1476 = vmatpush3.bf16.msra.mxu0 %v1668_v6 }
  0xa1   :  { %1477 = vmatprep.subr.bf16.mxu0 %v1718_v46 }
  0xa4   :  { %1478 = vmatpush3.bf16.msra.mxu0 %v1669_v7 }
  0xa5   :  { %1479 = vmatprep.subr.bf16.mxu0 %v1718_v46 }
  0xa8   :  { %1480 = vmatpush3.bf16.msra.mxu0 %v1670_v8 }
  0xa9   :  { %1481 = vmatprep.subr.bf16.mxu0 %v1718_v46  ;;  %v217_v46 = vrot.slane %v1841_v13, %v216_v43 }
  0xac   :  { %1482 = vmatpush3.bf16.msra.mxu0 %v1671_v9 }
  0xef   :  { %v932_v15 = vpop.f32.mrf.mxu1 }
  0xf1   :  { %v934_v19 = vpop.f32.mrf.mxu1 }
  0xf3   :  { %v936_v26 = vpop.f32.mrf.mxu1 }
  0xf5   :  { %v938_v32 = vpop.f32.mrf.mxu1 }
 0x10e   :  { %v889_v17 = vpop.f32.mrf.mxu0 }
 0x10f   :  { %v890_v18 = vadd.f32 %v889_v17, %v209_v14 }
 0x110   :  { %v891_v21 = vpop.f32.mrf.mxu0 }
 0x111   :  { %v933_v22 = vadd.f32 %v932_v15, %v890_v18  ;;  %v892_v27 = vadd.f32 %v891_v21, %v213_v20 }
 0x112   :  { %v893_v23 = vpop.f32.mrf.mxu0 }
 0x113   :  { %v1395_v24 = vmul.f32 -1.442695, %v933_v22  ;;  %v894_v25 = vadd.f32 %v893_v23, %v209_v14  ;;  %v935_v30 = vadd.f32 %v934_v19, %v892_v27 }
 0x114   :  { %v895_v0 = vpop.f32.mrf.mxu0 }
 0x115   :  { %1672 = vpow2.f32 %v1395_v24  ;;  %v937_v28 = vadd.f32 %v936_v26, %v894_v25  ;;  %v896_v31 = vadd.f32 %v895_v0, %v213_v20  ;;  %v1397_v35 = vmul.f32 -1.442695, %v935_v30 }
 0x116   :  { %v224_v0 = vsub.s32 4, %v1835_v11 }
 0x117   :  { %v1396_v29 = vmul.f32 -1.442695, %v937_v28  ;;  %v939_v36 = vadd.f32 %v938_v32, %v896_v31 }
 0x118   :  { %v225_v30 = vrot.slane %v1841_v13, %v224_v0 }
 0x119   :  { %1674 = vpow2.f32 %v1396_v29  ;;  %v1398_v38 = vmul.f32 -1.442695, %v939_v36 }
 0x11a   :  { %1676 = vpow2.f32 %v1397_v35 }
 0x11b   :  { %1678 = vpow2.f32 %v1398_v38 }
 0x122   :  { %v1673_v39 = vpop.eup %1672 }
 0x123   :  { %v1115_v40 = vadd.f32 1.0, %v1673_v39 }
 0x125   :  { %1680 = vrcp.f32 %v1115_v40 }
 0x126   :  { %v1675_v41 = vpop.eup %1674 }
 0x127   :  { %v1116_v42 = vadd.f32 1.0, %v1675_v41  ;;  %v1677_v45 = vpop.eup %1676 }
 0x128   :  { %v1127_v50 = vadd.f32 1.0, %v1677_v45  ;;  %v1679_v53 = vpop.eup %1678 }
 0x129   :  { %1682 = vrcp.f32 %v1116_v42  ;;  %v1128_v60 = vadd.f32 1.0, %v1679_v53 }
 0x12a   :  { %1684 = vrcp.f32 %v1127_v50 }
 0x12b   :  { %1686 = vrcp.f32 %v1128_v60 }
 0x12e   :  { %v1018_v49 = vpop.f32.mrf.mxu0 }
 0x12f   :  { %v975_v48 = vpop.f32.mrf.mxu1 }
 0x130   :  { %v1020_v52 = vpop.f32.mrf.mxu0  ;;  %v976_v54 = vadd.f32 %v975_v48, %v217_v46 }
 0x131   :  { %v977_v51 = vpop.f32.mrf.mxu1 }
 0x132   :  { %v978_v55 = vadd.f32 %v977_v51, %v221_v47  ;;  %v1022_v57 = vpop.f32.mrf.mxu0  ;;  %v1681_v59 = vpop.eup %1680  ;;  %v1019_v62 = vadd.f32 %v1018_v49, %v976_v54 }
 0x133   :  { %v979_v56 = vpop.f32.mrf.mxu1 }
 0x134   :  { %v1021_v58 = vadd.f32 %v1020_v52, %v978_v55  ;;  %v980_v1 = vadd.f32 %v979_v56, %v217_v46  ;;  %v1024_v3 = vpop.f32.mrf.mxu0 }
 0x135   :  { %v981_v61 = vpop.f32.mrf.mxu1 }
 0x136   :  { %v1133_v63 = vmul.f32 %v1681_v59, %v1021_v58  ;;  %v982_v2 = vadd.f32 %v981_v61, %v221_v47  ;;  %v1683_v37 = vpop.eup %1682  ;;  %v1023_v6 = vadd.f32 %v1022_v57, %v980_v1 }
 0x137   :  { %v1685_v9 = vpop.eup %1684 }
 0x138   :  { %v1135_v4 = vadd.f32 %v1133_v63, %v1019_v62  ;;  %v1025_v5 = vadd.f32 %v1024_v3, %v982_v2  ;;  %v1687_v10 = vpop.eup %1686  ;;  %v1139_v12 = vsub.f32 1.0, %v1685_v9  ;;  %v1143_v16 = vmul.f32 %v1685_v9, %v1762_v33 }
 0x139   :  { %v1140_v17 = vsub.f32 1.0, %v1687_v10  ;;  %v1144_v21 = vmul.f32 %v1687_v10, %v1767_v34 }
 0x13a   :  { %1688 = vtanh.f32 %v1135_v4  ;;  %v1134_v7 = vmul.f32 %v1683_v37, %v1025_v5 }
 0x13c   :  { %v1136_v8 = vadd.f32 %v1134_v7, %v1023_v6 }
 0x13e   :  { %1690 = vtanh.f32 %v1136_v8 }
 0x147   :  { %v1689_v14 = vpop.eup %1688 }
 0x148   :  { %v1141_v15 = vmul.f32 %v1689_v14, %v1139_v12 }
 0x14a   :  { %v1145_v18 = vadd.f32 %v1143_v16, %v1141_v15 }
 0x14b   :  { %v1691_v19 = vpop.eup %1690 }
 0x14c   :  { %v1142_v20 = vmul.f32 %v1691_v19, %v1140_v17  ;;  %1262 = vst [vmem:[%s1872_s6] sm:$0xff] %v1145_v18 }
 0x14e   :  { %v1146_v22 = vadd.f32 %v1144_v21, %v1142_v20 }
 0x14f   :  { %v1102_v24 = vpop.f32.mrf.mxu1  ;;  %v1423_v27 = vpop.f32.mrf.mxu0 }
 0x150   :  { %v1147_v23 = vpack.c.bf16 %v1146_v22, %v1145_v18  ;;  %1263 = vst [vmem:[%s1872_s6 + $0x8] sm:$0xff] %v1146_v22 }
 0x151   :  { %v1465_v25 = vpop.f32.mrf.mxu1  ;;  %v1424_v28 = vpop.f32.mrf.mxu0 }
 0x152   :  { %1484 = vmatmul.mubr.bf16.vlgmr.msra.gmra.mxu0 %v1147_v23  ;;  %v1425_v29 = vadd.f32 %v1424_v28, %v1423_v27 }
 0x153   :  { %v1105_v33 = vpop.f32.mrf.mxu1  ;;  %v1426_v34 = vpop.f32.mrf.mxu0 }
 0x154   :  { %v1062_v35 = vadd.f32 %v1425_v29, %v225_v30 }
 0x155   :  { %v1466_v26 = vpop.f32.mrf.mxu1  ;;  %v1427_v31 = vpop.f32.mrf.mxu0 }
 0x156   :  { %v1428_v32 = vadd.f32 %v1427_v31, %v1426_v34  ;;  %v1103_v36 = vadd.f32 %v1102_v24, %v1062_v35 }
 0x158   :  { %v1065_v38 = vadd.f32 %v1428_v32, %v225_v30 }
 0x15a   :  { %v1106_v42 = vadd.f32 %v1105_v33, %v1065_v38 }
 0x212   :  { %v1246_v39 = vpop.f32.mrf.mxu0 }
 0x213   :  { %v1253_v40 = vadd.f32 %v1246_v39, %v1103_v36 }
 0x214   :  { %v1485_v41 = vpop.f32.mrf.mxu0 }
 0x215   :  { %1255 = vst [vmem:[%s1871_s5] sm:$0xff] %v1253_v40 }
 0x216   :  { %v1249_v43 = vpop.f32.mrf.mxu0 }
 0x217   :  { %v1254_v44 = vadd.f32 %v1249_v43, %v1106_v42 }
 0x218   :  { %v1486_v11 = vpop.f32.mrf.mxu0 }
 0x219   :  { %1256 = vst [vmem:[%s1871_s5 + $0x8] sm:$0xff] %v1254_v44 }
 0x21a   :  { %1272 = vsyncpa [#allocation4], 1 }

</bundles_post_ra>
